<compile_context>
chip_gen: v6e
topology: v6e:2x2x1
jax: 0.10.0
libtpu: 0.0.40
codegen_flags: <defaults>
</compile_context>

<pallas_src>
import math
import functools

import jax
import jax.numpy as jnp
from jax import lax
from jax.experimental import pallas as pl
from jax.experimental.pallas import tpu as pltpu


# ------------------------------------------------------------------ kernel ---
def _mlp_kernel(x_ref, w0_ref, b0_ref, wh_ref, bh_ref, wo_ref, bo_ref,
                o_ref, h_ref, *, n_layers: int):
    """Fused MLP: h = gelu(x@W0+b0); repeat h = gelu(h@Wh+bh); out = h@Wo+bo."""
    c = math.sqrt(2.0 / math.pi)

    def fast_gelu(v):
        # 0.5 * v * (1 + tanh(sqrt(2/pi) * (v + 0.044715 * v^3)))  -> EUP tanh
        return 0.5 * v * (1.0 + jnp.tanh(c * (v + 0.044715 * v * v * v)))

    # ---- input layer (activation kept resident in VMEM scratch) ----
    h_ref[...] = fast_gelu(
        jnp.dot(x_ref[...], w0_ref[...], preferred_element_type=jnp.float32)
        + b0_ref[...])

    # ---- n_layers shared hidden layers (same wh/bh every iteration) ----
    def body(i, carry):
        h_ref[...] = fast_gelu(
            jnp.dot(h_ref[...], wh_ref[...], preferred_element_type=jnp.float32)
            + bh_ref[...])
        return carry

    if n_layers > 0:
        lax.fori_loop(0, n_layers, body, 0, unroll=True)

    # ---- output layer (no activation) ----
    o_ref[...] = (jnp.dot(h_ref[...], wo_ref[...],
                          preferred_element_type=jnp.float32)
                  + bo_ref[...]).astype(o_ref.dtype)


# ----------------------------------------------------------------- wrapper ---
_LANE = 128   # lane width: last dim must be a multiple of 128 for dense vst
_SUB = 8      # sublane width: second-to-last dim padded to a multiple of 8


def _round_up(n, m):
    return ((n + m - 1) // m) * m


def mlp_forward(x, params, n_layers):
    """Single fused Pallas call; pads to (8, 128)-aligned tiles, slices back."""
    w0, b0 = params["in"]
    wh, bh = params["hid"]
    wo, bo = params["out"]

    B, Din = x.shape
    H = w0.shape[1]
    Dout = wo.shape[1]

    Bp = _round_up(B, _SUB)
    Dinp = _round_up(Din, _LANE)
    Hp = _round_up(H, _LANE)
    Doutp = _round_up(Dout, _LANE)

    # Zero-pad (NOT garbage-pad) so padded lanes stay exactly zero through gelu.
    xp = jnp.zeros((Bp, Dinp), x.dtype).at[:B, :Din].set(x)
    w0p = jnp.zeros((Dinp, Hp), w0.dtype).at[:Din, :H].set(w0)
    b0p = jnp.zeros((1, Hp), b0.dtype).at[0, :H].set(b0)
    whp = jnp.zeros((Hp, Hp), wh.dtype).at[:H, :H].set(wh)
    bhp = jnp.zeros((1, Hp), bh.dtype).at[0, :H].set(bh)
    wop = jnp.zeros((Hp, Doutp), wo.dtype).at[:H, :Dout].set(wo)
    bop = jnp.zeros((1, Doutp), bo.dtype).at[0, :Dout].set(bo)

    kernel = functools.partial(_mlp_kernel, n_layers=n_layers)

    out_p = pl.pallas_call(
        kernel,
        out_shape=jax.ShapeDtypeStruct((Bp, Doutp), x.dtype),
        # No grid: everything (all weights + activation scratch) fits in VMEM at
        # these sizes; the hidden activation lives in scratch across all layers.
        # TODO(synk): if batch/hidden are ever scaled up, grid over batch rows
        # (tm>=256) with dimension_semantics=("parallel",) and re-derive VMEM
        # budget per chip (v7x has 64 MiB physical / 32 MiB default scoped).
        scratch_shapes=[pltpu.VMEM((Bp, Hp), jnp.float32)],
    )(xp, w0p, b0p, whp, bhp, wop, bop)

    return out_p[:B, :Dout]


# ------------------------------------------------------------------- params ---
def init_mlp_params(key, input_dim, output_n, hidden_dim):
    """Deterministic init mimicking nn.Linear's uniform(-1/sqrt(fan_in), ...)."""
    def linear_init(k, fan_in, fan_out):
        kw, kb = jax.random.split(k)
        bound = 1.0 / math.sqrt(fan_in)
        w = jax.random.uniform(kw, (fan_in, fan_out), jnp.float32, -bound, bound)
        b = jax.random.uniform(kb, (fan_out,), jnp.float32, -bound, bound)
        return w, b

    k0, kh, ko = jax.random.split(key, 3)
    return {
        "in":  linear_init(k0, input_dim, hidden_dim),
        "hid": linear_init(kh, hidden_dim, hidden_dim),   # shared across n_layers
        "out": linear_init(ko, hidden_dim, output_n),
    }


# -------------------------------------------------------------------- main ---
if __name__ == "__main__":
    input_dim, output_n, hidden_dim, n_layers = 16, 8, 32, 2
    batch = 8

    key = jax.random.PRNGKey(0)
    kx, kp = jax.random.split(key)

    x = jax.random.normal(kx, (batch, input_dim), dtype=jnp.float32)
    params = init_mlp_params(kp, input_dim, output_n, hidden_dim)

    out = mlp_forward(x, params, n_layers)
    jax.block_until_ready(out)

    # pure-JAX reference check (same shared-hidden-weight semantics as PyTorch)
    def fast_gelu(v):
        return 0.5 * v * (1.0 + jnp.tanh(math.sqrt(2.0 / math.pi) *
                                         (v + 0.044715 * v ** 3)))

    h_ref = fast_gelu(
        jnp.dot(x, params["in"][0], preferred_element_type=jnp.float32)
        + params["in"][1])
    for _ in range(n_layers):
        h_ref = fast_gelu(
            jnp.dot(h_ref, params["hid"][0], preferred_element_type=jnp.float32)
            + params["hid"][1])
    ref = (jnp.dot(h_ref, params["out"][0], preferred_element_type=jnp.float32)
           + params["out"][1])

    assert out.shape == (batch, output_n)
    assert jnp.allclose(out, ref, atol=1e-4, rtol=1e-4), \
        f"max abs err = {jnp.max(jnp.abs(out - ref))}"

    print("KERNEL_OK")
</pallas_src>

<mosaic_0001>
module attributes {stable_mosaic.version = 11 : i64} {
  func.func @_mlp_kernel(%arg0: memref<8x128xf32, #tpu.memory_space<vmem>>, %arg1: memref<128x128xf32, #tpu.memory_space<vmem>>, %arg2: memref<1x128xf32, #tpu.memory_space<vmem>>, %arg3: memref<128x128xf32, #tpu.memory_space<vmem>>, %arg4: memref<1x128xf32, #tpu.memory_space<vmem>>, %arg5: memref<128x128xf32, #tpu.memory_space<vmem>>, %arg6: memref<1x128xf32, #tpu.memory_space<vmem>>, %arg7: memref<8x128xf32, #tpu.memory_space<vmem>>, %arg8: memref<8x128xf32, #tpu.memory_space<vmem>>) attributes {dimension_semantics = [], scalar_prefetch = 0 : i64, scratch_operands = 1 : i64, tpu.core_type = #tpu.core_type<tc>} {
    %c0 = arith.constant 0 : index
    %c0_0 = arith.constant 0 : index
    %0 = vector.load %arg0[%c0, %c0_0] : memref<8x128xf32, #tpu.memory_space<vmem>>, vector<8x128xf32>
    %c0_1 = arith.constant 0 : index
    %c0_2 = arith.constant 0 : index
    %1 = vector.load %arg1[%c0_1, %c0_2] : memref<128x128xf32, #tpu.memory_space<vmem>>, vector<128x128xf32>
    %cst = arith.constant dense<0.000000e+00> : vector<8x128xf32>
    %2 = tpu.matmul %0, %1, %cst {dimension_numbers = #tpu.dot_dimension_numbers<[1], [0], [0], [1], [0, 0, 1, 1], [], []>} : vector<8x128xf32>, vector<128x128xf32>, vector<8x128xf32> -> vector<8x128xf32>
    %c0_3 = arith.constant 0 : index
    %c0_4 = arith.constant 0 : index
    %3 = vector.load %arg2[%c0_3, %c0_4] : memref<1x128xf32, #tpu.memory_space<vmem>>, vector<1x128xf32>
    %4 = vector.broadcast %3 : vector<1x128xf32> to vector<8x128xf32>
    %5 = arith.addf %2, %4 : vector<8x128xf32>
    %cst_5 = arith.constant 5.000000e-01 : f32
    %6 = vector.broadcast %cst_5 : f32 to vector<8x128xf32>
    %7 = arith.mulf %6, %5 : vector<8x128xf32>
    %cst_6 = arith.constant 4.471500e-02 : f32
    %8 = vector.broadcast %cst_6 : f32 to vector<8x128xf32>
    %9 = arith.mulf %8, %5 : vector<8x128xf32>
    %10 = arith.mulf %9, %5 : vector<8x128xf32>
    %11 = arith.mulf %10, %5 : vector<8x128xf32>
    %12 = arith.addf %5, %11 : vector<8x128xf32>
    %cst_7 = arith.constant 0.797884583 : f32
    %13 = vector.broadcast %cst_7 : f32 to vector<8x128xf32>
    %14 = arith.mulf %13, %12 : vector<8x128xf32>
    %15 = math.tanh %14 : vector<8x128xf32>
    %cst_8 = arith.constant 1.000000e+00 : f32
    %16 = vector.broadcast %cst_8 : f32 to vector<8x128xf32>
    %17 = arith.addf %16, %15 : vector<8x128xf32>
    %18 = arith.mulf %7, %17 : vector<8x128xf32>
    %c0_9 = arith.constant 0 : index
    %c0_10 = arith.constant 0 : index
    %19 = vector.load %arg8[%c0_9, %c0_10] : memref<8x128xf32, #tpu.memory_space<vmem>>, vector<8x128xf32>
    tpu.vector_store %arg8[%c0_9, %c0_10], %18 {strides = array<i32>} : memref<8x128xf32, #tpu.memory_space<vmem>>, vector<8x128xf32>,
    %c0_i32 = arith.constant 0 : i32
    %c0_11 = arith.constant 0 : index
    %c0_12 = arith.constant 0 : index
    %20 = vector.load %arg8[%c0_11, %c0_12] : memref<8x128xf32, #tpu.memory_space<vmem>>, vector<8x128xf32>
    %c0_13 = arith.constant 0 : index
    %c0_14 = arith.constant 0 : index
    %21 = vector.load %arg3[%c0_13, %c0_14] : memref<128x128xf32, #tpu.memory_space<vmem>>, vector<128x128xf32>
    %cst_15 = arith.constant dense<0.000000e+00> : vector<8x128xf32>
    %22 = tpu.matmul %20, %21, %cst_15 {dimension_numbers = #tpu.dot_dimension_numbers<[1], [0], [0], [1], [0, 0, 1, 1], [], []>} : vector<8x128xf32>, vector<128x128xf32>, vector<8x128xf32> -> vector<8x128xf32>
    %c0_16 = arith.constant 0 : index
    %c0_17 = arith.constant 0 : index
    %23 = vector.load %arg4[%c0_16, %c0_17] : memref<1x128xf32, #tpu.memory_space<vmem>>, vector<1x128xf32>
    %24 = vector.broadcast %23 : vector<1x128xf32> to vector<8x128xf32>
    %25 = arith.addf %22, %24 : vector<8x128xf32>
    %cst_18 = arith.constant 5.000000e-01 : f32
    %26 = vector.broadcast %cst_18 : f32 to vector<8x128xf32>
    %27 = arith.mulf %26, %25 : vector<8x128xf32>
    %cst_19 = arith.constant 4.471500e-02 : f32
    %28 = vector.broadcast %cst_19 : f32 to vector<8x128xf32>
    %29 = arith.mulf %28, %25 : vector<8x128xf32>
    %30 = arith.mulf %29, %25 : vector<8x128xf32>
    %31 = arith.mulf %30, %25 : vector<8x128xf32>
    %32 = arith.addf %25, %31 : vector<8x128xf32>
    %cst_20 = arith.constant 0.797884583 : f32
    %33 = vector.broadcast %cst_20 : f32 to vector<8x128xf32>
    %34 = arith.mulf %33, %32 : vector<8x128xf32>
    %35 = math.tanh %34 : vector<8x128xf32>
    %cst_21 = arith.constant 1.000000e+00 : f32
    %36 = vector.broadcast %cst_21 : f32 to vector<8x128xf32>
    %37 = arith.addf %36, %35 : vector<8x128xf32>
    %38 = arith.mulf %27, %37 : vector<8x128xf32>
    %c0_22 = arith.constant 0 : index
    %c0_23 = arith.constant 0 : index
    %39 = vector.load %arg8[%c0_22, %c0_23] : memref<8x128xf32, #tpu.memory_space<vmem>>, vector<8x128xf32>
    tpu.vector_store %arg8[%c0_22, %c0_23], %38 {strides = array<i32>} : memref<8x128xf32, #tpu.memory_space<vmem>>, vector<8x128xf32>,
    %c1_i32 = arith.constant 1 : i32
    %c0_24 = arith.constant 0 : index
    %c0_25 = arith.constant 0 : index
    %40 = vector.load %arg8[%c0_24, %c0_25] : memref<8x128xf32, #tpu.memory_space<vmem>>, vector<8x128xf32>
    %c0_26 = arith.constant 0 : index
    %c0_27 = arith.constant 0 : index
    %41 = vector.load %arg3[%c0_26, %c0_27] : memref<128x128xf32, #tpu.memory_space<vmem>>, vector<128x128xf32>
    %cst_28 = arith.constant dense<0.000000e+00> : vector<8x128xf32>
    %42 = tpu.matmul %40, %41, %cst_28 {dimension_numbers = #tpu.dot_dimension_numbers<[1], [0], [0], [1], [0, 0, 1, 1], [], []>} : vector<8x128xf32>, vector<128x128xf32>, vector<8x128xf32> -> vector<8x128xf32>
    %c0_29 = arith.constant 0 : index
    %c0_30 = arith.constant 0 : index
    %43 = vector.load %arg4[%c0_29, %c0_30] : memref<1x128xf32, #tpu.memory_space<vmem>>, vector<1x128xf32>
    %44 = vector.broadcast %43 : vector<1x128xf32> to vector<8x128xf32>
    %45 = arith.addf %42, %44 : vector<8x128xf32>
    %cst_31 = arith.constant 5.000000e-01 : f32
    %46 = vector.broadcast %cst_31 : f32 to vector<8x128xf32>
    %47 = arith.mulf %46, %45 : vector<8x128xf32>
    %cst_32 = arith.constant 4.471500e-02 : f32
    %48 = vector.broadcast %cst_32 : f32 to vector<8x128xf32>
    %49 = arith.mulf %48, %45 : vector<8x128xf32>
    %50 = arith.mulf %49, %45 : vector<8x128xf32>
    %51 = arith.mulf %50, %45 : vector<8x128xf32>
    %52 = arith.addf %45, %51 : vector<8x128xf32>
    %cst_33 = arith.constant 0.797884583 : f32
    %53 = vector.broadcast %cst_33 : f32 to vector<8x128xf32>
    %54 = arith.mulf %53, %52 : vector<8x128xf32>
    %55 = math.tanh %54 : vector<8x128xf32>
    %cst_34 = arith.constant 1.000000e+00 : f32
    %56 = vector.broadcast %cst_34 : f32 to vector<8x128xf32>
    %57 = arith.addf %56, %55 : vector<8x128xf32>
    %58 = arith.mulf %47, %57 : vector<8x128xf32>
    %c0_35 = arith.constant 0 : index
    %c0_36 = arith.constant 0 : index
    %59 = vector.load %arg8[%c0_35, %c0_36] : memref<8x128xf32, #tpu.memory_space<vmem>>, vector<8x128xf32>
    tpu.vector_store %arg8[%c0_35, %c0_36], %58 {strides = array<i32>} : memref<8x128xf32, #tpu.memory_space<vmem>>, vector<8x128xf32>,
    %c0_37 = arith.constant 0 : index
    %c0_38 = arith.constant 0 : index
    %60 = vector.load %arg8[%c0_37, %c0_38] : memref<8x128xf32, #tpu.memory_space<vmem>>, vector<8x128xf32>
    %c0_39 = arith.constant 0 : index
    %c0_40 = arith.constant 0 : index
    %61 = vector.load %arg5[%c0_39, %c0_40] : memref<128x128xf32, #tpu.memory_space<vmem>>, vector<128x128xf32>
    %cst_41 = arith.constant dense<0.000000e+00> : vector<8x128xf32>
    %62 = tpu.matmul %60, %61, %cst_41 {dimension_numbers = #tpu.dot_dimension_numbers<[1], [0], [0], [1], [0, 0, 1, 1], [], []>} : vector<8x128xf32>, vector<128x128xf32>, vector<8x128xf32> -> vector<8x128xf32>
    %c0_42 = arith.constant 0 : index
    %c0_43 = arith.constant 0 : index
    %63 = vector.load %arg6[%c0_42, %c0_43] : memref<1x128xf32, #tpu.memory_space<vmem>>, vector<1x128xf32>
    %64 = vector.broadcast %63 : vector<1x128xf32> to vector<8x128xf32>
    %65 = arith.addf %62, %64 : vector<8x128xf32>
    %c0_44 = arith.constant 0 : index
    %c0_45 = arith.constant 0 : index
    %66 = vector.load %arg7[%c0_44, %c0_45] : memref<8x128xf32, #tpu.memory_space<vmem>>, vector<8x128xf32>
    tpu.vector_store %arg7[%c0_44, %c0_45], %65 {strides = array<i32>} : memref<8x128xf32, #tpu.memory_space<vmem>>, vector<8x128xf32>,
    return
  }
}

</mosaic_0001>

<bundles_post_ra>
// kernel: tpu_custom_call.1
= control target key start
LH: loop header
LB: loop body
LE: loop exit
PB: predicated region body
PF: predicated region fallthrough
CT: control target
= control target key end

     0   :  { %12 = vsyncpa [#allocation4], 0  ;;  %s997_s0 = inlined_call_operand.hbm [shape: f32[8,128], index: 0, kind: input, shape index: {}]   ;;  %s998_s1 = inlined_call_operand.hbm [shape: f32[128,128], index: 1, kind: input, shape index: {}]   ;;  %s999_s2 = inlined_call_operand.vmem [shape: f32[1,128], index: 2, kind: input, shape index: {}]   ;;  %s1000_s3 = inlined_call_operand.hbm [shape: f32[128,128], index: 3, kind: input, shape index: {}]   ;;  %s1001_s4 = inlined_call_operand.vmem [shape: f32[1,128], index: 4, kind: input, shape index: {}]   ;;  %s1002_s5 = inlined_call_operand.hbm [shape: f32[128,128], index: 5, kind: input, shape index: {}]   ;;  %s1003_s6 = inlined_call_operand.vmem [shape: f32[1,128], index: 6, kind: input, shape index: {}]   ;;  %s1004_s7 = inlined_call_operand.hbm [shape: f32[8,128], index: 7, kind: output, shape index: {}]  }
   0x1   :  { %13 = vsyncpa [#allocation7], 0 }
   0x2   :  { %14 = vsyncpa [#allocation10], 0 }
   0x3   :  { %15 = vsyncpa [#allocation5], 0  ;;  %s839_s24 = smov [#allocation6]  }
   0x4   :  { %s31_s25 = sshll.u32 %s839_s24, 4  ;;  %s32_s25 = int_to_ptr.vmem [resolvable:$true] %s31_s25 }
   0x5   :  { %s739_s26 = scalar_lea.vmem %s32_s25, 2048  ;;  %p744_p1 = scmp.lt.s32.totalorder %s32_s25, %s32_s25 }
   0x6   :  { %p740_p0 = scmp.ne.s32.totalorder %s32_s25, %s739_s26  ;;  %p745_p2 = scmp.lt.s32.totalorder %s739_s26, %s739_s26 }
   0x8   :  { %p746_p3 = por %p745_p2, %p744_p1 }
   0xa   :  { %p747_p4 = pnand %p746_p3, %p740_p0 }
   0xc   :  { %750 = shalt.err (!%p747_p4)
}
   0xd   :  { %s840_s27 = smov 128   ;;  %s841_s28 = smov 8  }
   0xe   :  { %37 = dma.hbm_to_vmem [thread:$0]  %s998_s1, 2048, %s32_s25, [#allocation7], %s840_s27, %s840_s27, %s841_s28  }
   0xf   :  { %s842_s8 = smov [#allocation3]   ;;  %s843_s10 = smov [#allocation8]  }
  0x10   :  { %s22_s9 = sshll.u32 %s842_s8, 4  ;;  %s45_s11 = sshll.u32 %s843_s10, 4  ;;  %s23_s9 = int_to_ptr.vmem [resolvable:$true] %s22_s9  ;;  %s46_s11 = int_to_ptr.vmem [resolvable:$true] %s45_s11 }
  0x11   :  { %s759_s12 = scalar_lea.vmem %s23_s9, 128  ;;  %p764_p6 = scmp.lt.s32.totalorder %s23_s9, %s23_s9 }
  0x12   :  { %p760_p5 = scmp.ne.s32.totalorder %s23_s9, %s759_s12  ;;  %p765_p7 = scmp.lt.s32.totalorder %s759_s12, %s759_s12 }
  0x14   :  { %p766_p8 = por %p765_p7, %p764_p6 }
  0x16   :  { %p767_p9 = pnand %p766_p8, %p760_p5 }
  0x18   :  { %770 = shalt.err (!%p767_p9)
}
  0x19   :  { %25 = dma.hbm_to_vmem [thread:$0]  %s997_s0, 128, %s23_s9, [#allocation4]  }
  0x1a   :  { %s779_s15 = scalar_lea.vmem %s46_s11, 2048  ;;  %p784_p11 = scmp.lt.s32.totalorder %s46_s11, %s46_s11 }
  0x1b   :  { %p780_p10 = scmp.ne.s32.totalorder %s46_s11, %s779_s15  ;;  %p785_p12 = scmp.lt.s32.totalorder %s779_s15, %s779_s15 }
  0x1d   :  { %p786_p13 = por %p785_p12, %p784_p11 }
  0x1f   :  { %p787_p0 = pnand %p786_p13, %p780_p10 }
  0x21   :  { %790 = shalt.err (!%p787_p0)
}
  0x22   :  { %51 = dma.hbm_to_vmem [thread:$0]  %s1000_s3, 2048, %s46_s11, [#allocation7], %s840_s27, %s840_s27, %s841_s28  }
  0x23   :  { %s844_s17 = smov [#allocation9]  }
  0x24   :  { %s59_s18 = sshll.u32 %s844_s17, 4  ;;  %s60_s18 = int_to_ptr.vmem [resolvable:$true] %s59_s18 }
  0x25   :  { %s799_s19 = scalar_lea.vmem %s60_s18, 2048  ;;  %p804_p2 = scmp.lt.s32.totalorder %s60_s18, %s60_s18 }
  0x26   :  { %p800_p1 = scmp.ne.s32.totalorder %s60_s18, %s799_s19  ;;  %p805_p3 = scmp.lt.s32.totalorder %s799_s19, %s799_s19 }
  0x28   :  { %p806_p4 = por %p805_p3, %p804_p2 }
  0x2a   :  { %p807_p5 = pnand %p806_p4, %p800_p1 }
  0x2c   :  { %810 = shalt.err (!%p807_p5)
}
  0x2d   :  { %65 = dma.hbm_to_vmem [thread:$0]  %s1002_s5, 2048, %s60_s18, [#allocation10], %s840_s27, %s840_s27, %s841_s28  }
  0x2e   :  { %831 = dma.done.wait [#allocation4], 128  }
  0x2f   :  { %832 = vsyncadd [#allocation4], 4294967168 }
  0x30   :  { %833 = dma.done.wait [#allocation7], 4096  }
  0x31   :  { %834 = vsyncadd [#allocation7], 4294963200 }
  0x32   :  { %835 = dma.done.wait [#allocation10], 2048  }
  0x33   :  { %836 = vsyncadd [#allocation10], 4294965248  ;;  %v845_v0 = vmov 0.0   ;;  %vm846_vm0 = vmmov 0   ;;  %v96_v1 = vld [vmem:[#allocation6 + $0x78] sm:$0xff]  ;;  %v95_v2 = vld [vmem:[#allocation6 + $0x70] sm:$0xff] }
  0x34   :  { %576 = vmatprep.subr.mxu0 %v845_v0  ;;  %608 = vmatprep.mubr.msk.f32.mxu0 %vm846_vm0, %v845_v0  ;;  %v94_v3 = vld [vmem:[#allocation6 + $0x68] sm:$0xff]  ;;  %v93_v4 = vld [vmem:[#allocation6 + $0x60] sm:$0xff]  ;;  %v92_v5 = vld [vmem:[#allocation6 + $0x58] sm:$0xff]  ;;  %s847_s23 = smov [#allocation11]  }
  0x35   :  { %611 = vmatprep.subr.mxu1 %v845_v0  ;;  %643 = vmatprep.mubr.msk.f32.mxu1 %vm846_vm0, %v845_v0  ;;  %v91_v6 = vld [vmem:[#allocation6 + $0x50] sm:$0xff]  ;;  %v90_v7 = vld [vmem:[#allocation6 + $0x48] sm:$0xff]  ;;  %v89_v8 = vld [vmem:[#allocation6 + $0x40] sm:$0xff]  ;;  %s493_s24 = sshll.u32 %s847_s23, 4  ;;  %s494_s24 = int_to_ptr.vmem [resolvable:$true] %s493_s24 }
  0x36   :  { %577 = vmatpush3.msra.mxu0 %v96_v1  ;;  %v88_v9 = vld [vmem:[#allocation6 + $0x38] sm:$0xff]  ;;  %v87_v10 = vld [vmem:[#allocation6 + $0x30] sm:$0xff]  ;;  %v86_v11 = vld [vmem:[#allocation6 + $0x28] sm:$0xff]  ;;  %s811_s25 = scalar_lea.vmem %s494_s24, 128  ;;  %p816_p7 = scmp.lt.s32.totalorder %s494_s24, %s494_s24 }
  0x37   :  { %578 = vmatprep.subr.mxu0 %v845_v0  ;;  %v85_v12 = vld [vmem:[#allocation6 + $0x20] sm:$0xff]  ;;  %v84_v13 = vld [vmem:[#allocation6 + $0x18] sm:$0xff]  ;;  %v83_v14 = vld [vmem:[#allocation6 + $0x10] sm:$0xff]  ;;  %p812_p6 = scmp.ne.s32.totalorder %s494_s24, %s811_s25  ;;  %p817_p8 = scmp.lt.s32.totalorder %s811_s25, %s811_s25 }
  0x38   :  { %579 = vmatpush3.msra.mxu0 %v95_v2  ;;  %v82_v15 = vld [vmem:[#allocation6 + $0x8] sm:$0xff]  ;;  %v81_v16 = vld [vmem:[#allocation6] sm:$0xff]  ;;  %v80_v17 = vld [vmem:[#allocation3] sm:$0xff] }
  0x39   :  { %580 = vmatprep.subr.mxu0 %v845_v0  ;;  %v200_v18 = vld [vmem:[#allocation8 + $0x78] sm:$0xff]  ;;  %v199_v19 = vld [vmem:[#allocation8 + $0x70] sm:$0xff]  ;;  %v198_v20 = vld [vmem:[#allocation8 + $0x68] sm:$0xff]  ;;  %p818_p9 = por %p817_p8, %p816_p7 }
  0x3a   :  { %581 = vmatpush3.msra.mxu0 %v94_v3  ;;  %612 = vmatpush3.msra.mxu1 %v200_v18  ;;  %v197_v21 = vld [vmem:[#allocation8 + $0x60] sm:$0xff]  ;;  %v196_v22 = vld [vmem:[#allocation8 + $0x58] sm:$0xff]  ;;  %v195_v23 = vld [vmem:[#allocation8 + $0x50] sm:$0xff] }
  0x3b   :  { %582 = vmatprep.subr.mxu0 %v845_v0  ;;  %613 = vmatprep.subr.mxu1 %v845_v0  ;;  %v194_v24 = vld [vmem:[#allocation8 + $0x48] sm:$0xff]  ;;  %v193_v25 = vld [vmem:[#allocation8 + $0x40] sm:$0xff]  ;;  %v192_v26 = vld [vmem:[#allocation8 + $0x38] sm:$0xff]  ;;  %p819_p10 = pnand %p818_p9, %p812_p6 }
  0x3c   :  { %583 = vmatpush3.msra.mxu0 %v93_v4  ;;  %614 = vmatpush3.msra.mxu1 %v199_v19  ;;  %v191_v27 = vld [vmem:[#allocation8 + $0x30] sm:$0xff]  ;;  %v190_v28 = vld [vmem:[#allocation8 + $0x28] sm:$0xff]  ;;  %v189_v29 = vld [vmem:[#allocation8 + $0x20] sm:$0xff] }
  0x3d   :  { %584 = vmatprep.subr.mxu0 %v845_v0  ;;  %615 = vmatprep.subr.mxu1 %v845_v0  ;;  %v188_v30 = vld [vmem:[#allocation8 + $0x18] sm:$0xff]  ;;  %v187_v31 = vld [vmem:[#allocation8 + $0x10] sm:$0xff]  ;;  %v186_v32 = vld [vmem:[#allocation8 + $0x8] sm:$0xff] }
  0x3e   :  { %585 = vmatpush3.msra.mxu0 %v92_v5  ;;  %616 = vmatpush3.msra.mxu1 %v198_v20  ;;  %v185_v33 = vld [vmem:[#allocation8] sm:$0xff]  ;;  %v504_v34 = vld [vmem:[%s999_s2] ss:$0 sm:$0xff]  ;;  %v407_v61 = vld [vmem:[#allocation9 + $0x70] sm:$0xff] }
  0x3f   :  { %586 = vmatprep.subr.mxu0 %v845_v0  ;;  %617 = vmatprep.subr.mxu1 %v845_v0  ;;  %v972_v47 = vld [vmem:[%s1001_s4] ss:$0 sm:$0xff]  ;;  %v406_v62 = vld [vmem:[#allocation9 + $0x68] sm:$0xff]  ;;  %v405_v63 = vld [vmem:[#allocation9 + $0x60] sm:$0xff] }
  0x40   :  { %587 = vmatpush3.msra.mxu0 %v91_v6  ;;  %618 = vmatpush3.msra.mxu1 %v197_v21  ;;  %v408_v60 = vld [vmem:[#allocation9 + $0x78] sm:$0xff]  ;;  %v403_v2 = vld [vmem:[#allocation9 + $0x50] sm:$0xff]  ;;  %v402_v3 = vld [vmem:[#allocation9 + $0x48] sm:$0xff] }
  0x41   :  { %588 = vmatprep.subr.mxu0 %v845_v0  ;;  %619 = vmatprep.subr.mxu1 %v845_v0  ;;  %v404_v1 = vld [vmem:[#allocation9 + $0x58] sm:$0xff]  ;;  %v401_v4 = vld [vmem:[#allocation9 + $0x40] sm:$0xff]  ;;  %v399_v6 = vld [vmem:[#allocation9 + $0x30] sm:$0xff] }
  0x42   :  { %589 = vmatpush3.msra.mxu0 %v90_v7  ;;  %620 = vmatpush3.msra.mxu1 %v196_v22  ;;  %v400_v5 = vld [vmem:[#allocation9 + $0x38] sm:$0xff]  ;;  %v398_v7 = vld [vmem:[#allocation9 + $0x28] sm:$0xff] }
  0x43   :  { %590 = vmatprep.subr.mxu0 %v845_v0  ;;  %621 = vmatprep.subr.mxu1 %v845_v0 }
  0x44   :  { %591 = vmatpush3.msra.mxu0 %v89_v8  ;;  %622 = vmatpush3.msra.mxu1 %v195_v23  ;;  %v397_v8 = vld [vmem:[#allocation9 + $0x20] sm:$0xff] }
  0x45   :  { %592 = vmatprep.subr.mxu0 %v845_v0  ;;  %623 = vmatprep.subr.mxu1 %v845_v0 }
  0x46   :  { %593 = vmatpush3.msra.mxu0 %v88_v9  ;;  %624 = vmatpush3.msra.mxu1 %v194_v24  ;;  %v396_v9 = vld [vmem:[#allocation9 + $0x18] sm:$0xff] }
  0x47   :  { %594 = vmatprep.subr.mxu0 %v845_v0  ;;  %625 = vmatprep.subr.mxu1 %v845_v0 }
  0x48   :  { %595 = vmatpush3.msra.mxu0 %v87_v10  ;;  %626 = vmatpush3.msra.mxu1 %v193_v25  ;;  %v395_v10 = vld [vmem:[#allocation9 + $0x10] sm:$0xff] }
  0x49   :  { %596 = vmatprep.subr.mxu0 %v845_v0  ;;  %627 = vmatprep.subr.mxu1 %v845_v0 }
  0x4a   :  { %597 = vmatpush3.msra.mxu0 %v86_v11  ;;  %628 = vmatpush3.msra.mxu1 %v192_v26  ;;  %v394_v11 = vld [vmem:[#allocation9 + $0x8] sm:$0xff] }
  0x4b   :  { %598 = vmatprep.subr.mxu0 %v845_v0  ;;  %629 = vmatprep.subr.mxu1 %v845_v0 }
  0x4c   :  { %599 = vmatpush3.msra.mxu0 %v85_v12  ;;  %630 = vmatpush3.msra.mxu1 %v191_v27  ;;  %v393_v12 = vld [vmem:[#allocation9] sm:$0xff] }
  0x4d   :  { %600 = vmatprep.subr.mxu0 %v845_v0  ;;  %631 = vmatprep.subr.mxu1 %v845_v0 }
  0x4e   :  { %601 = vmatpush3.msra.mxu0 %v84_v13  ;;  %632 = vmatpush3.msra.mxu1 %v190_v28 }
  0x4f   :  { %602 = vmatprep.subr.mxu0 %v845_v0  ;;  %633 = vmatprep.subr.mxu1 %v845_v0 }
  0x50   :  { %603 = vmatpush3.msra.mxu0 %v83_v14  ;;  %634 = vmatpush3.msra.mxu1 %v189_v29 }
  0x51   :  { %604 = vmatprep.subr.mxu0 %v845_v0  ;;  %635 = vmatprep.subr.mxu1 %v845_v0 }
  0x52   :  { %605 = vmatpush3.msra.mxu0 %v82_v15  ;;  %636 = vmatpush3.msra.mxu1 %v188_v30 }
  0x53   :  { %606 = vmatprep.subr.mxu0 %v845_v0  ;;  %637 = vmatprep.subr.mxu1 %v845_v0 }
  0x54   :  { %607 = vmatpush3.msra.mxu0 %v81_v16  ;;  %638 = vmatpush3.msra.mxu1 %v187_v31 }
  0x55   :  { %609 = vmatmul.mubr.f32.vlgmr.msra.gmra.mxu0 %v80_v17  ;;  %646 = vmatprep.subr.mxu0 %v845_v0 }
  0x56   :  { %678 = vmatprep.mubr.msk.f32.mxu0 %vm846_vm0, %v845_v0  ;;  %647 = vmatpush3.msra.mxu0 %v200_v18 }
  0x57   :  { %648 = vmatprep.subr.mxu0 %v845_v0  ;;  %639 = vmatprep.subr.mxu1 %v845_v0 }
  0x58   :  { %649 = vmatpush3.msra.mxu0 %v199_v19  ;;  %640 = vmatpush3.msra.mxu1 %v186_v32 }
  0x59   :  { %650 = vmatprep.subr.mxu0 %v845_v0  ;;  %641 = vmatprep.subr.mxu1 %v845_v0 }
  0x5a   :  { %651 = vmatpush3.msra.mxu0 %v198_v20  ;;  %642 = vmatpush3.msra.mxu1 %v185_v33 }
  0x5b   :  { %652 = vmatprep.subr.mxu0 %v845_v0  ;;  %681 = vmatprep.subr.mxu1 %v845_v0 }
  0x5c   :  { %653 = vmatpush3.msra.mxu0 %v197_v21 }
  0x5d   :  { %654 = vmatprep.subr.mxu0 %v845_v0 }
  0x5e   :  { %655 = vmatpush3.msra.mxu0 %v196_v22 }
  0x5f   :  { %656 = vmatprep.subr.mxu0 %v845_v0 }
  0x60   :  { %657 = vmatpush3.msra.mxu0 %v195_v23 }
  0x61   :  { %658 = vmatprep.subr.mxu0 %v845_v0 }
  0x62   :  { %659 = vmatpush3.msra.mxu0 %v194_v24 }
  0x63   :  { %660 = vmatprep.subr.mxu0 %v845_v0 }
  0x64   :  { %661 = vmatpush3.msra.mxu0 %v193_v25 }
  0x65   :  { %662 = vmatprep.subr.mxu0 %v845_v0 }
  0x66   :  { %663 = vmatpush3.msra.mxu0 %v192_v26 }
  0x67   :  { %664 = vmatprep.subr.mxu0 %v845_v0 }
  0x68   :  { %665 = vmatpush3.msra.mxu0 %v191_v27 }
  0x69   :  { %666 = vmatprep.subr.mxu0 %v845_v0 }
  0x6a   :  { %667 = vmatpush3.msra.mxu0 %v190_v28 }
  0x6b   :  { %668 = vmatprep.subr.mxu0 %v845_v0 }
  0x6c   :  { %669 = vmatpush3.msra.mxu0 %v189_v29 }
  0x6d   :  { %670 = vmatprep.subr.mxu0 %v845_v0 }
  0x6e   :  { %671 = vmatpush3.msra.mxu0 %v188_v30 }
  0x6f   :  { %672 = vmatprep.subr.mxu0 %v845_v0 }
  0x70   :  { %673 = vmatpush3.msra.mxu0 %v187_v31 }
  0x71   :  { %674 = vmatprep.subr.mxu0 %v845_v0 }
  0x72   :  { %675 = vmatpush3.msra.mxu0 %v186_v32 }
  0x73   :  { %676 = vmatprep.subr.mxu0 %v845_v0 }
  0x74   :  { %677 = vmatpush3.msra.mxu0 %v185_v33 }
 0x115   :  { %v170_v35 = vpop.f32.mrf.mxu0 }
 0x116   :  { %v171_v36 = vadd.f32 %v504_v34, %v170_v35 }
 0x117   :  { %v610_v37 = vpop.f32.mrf.mxu0 }
 0x118   :  { %v175_v38 = vmul.f32 0.044715, %v171_v36  ;;  %v174_v44 = vmul.f32 0.5, %v171_v36 }
 0x11a   :  { %v176_v39 = vmul.f32 %v175_v38, %v171_v36 }
 0x11c   :  { %v177_v40 = vmul.f32 %v176_v39, %v171_v36 }
 0x11e   :  { %v178_v41 = vadd.f32 %v177_v40, %v171_v36 }
 0x120   :  { %v179_v42 = vmul.f32 0.7978846, %v178_v41 }
 0x122   :  { %725 = vtanh.f32 %v179_v42 }
 0x12f   :  { %v726_v43 = vpop.eup %725 }
 0x130   :  { %v181_v45 = vadd.f32 1.0, %v726_v43 }
 0x132   :  { %v182_v46 = vmul.f32 %v181_v45, %v174_v44 }
 0x134   :  { %644 = vmatmul.mubr.f32.vlgmr.msra.gmra.mxu1 %v182_v46 }
 0x135   :  { %713 = vmatprep.mubr.msk.f32.mxu1 %vm846_vm0, %v845_v0  ;;  %682 = vmatpush3.msra.mxu1 %v408_v60 }
 0x136   :  { %683 = vmatprep.subr.mxu1 %v845_v0 }
 0x137   :  { %684 = vmatpush3.msra.mxu1 %v407_v61 }
 0x138   :  { %685 = vmatprep.subr.mxu1 %v845_v0 }
 0x139   :  { %686 = vmatpush3.msra.mxu1 %v406_v62 }
 0x13a   :  { %687 = vmatprep.subr.mxu1 %v845_v0 }
 0x13b   :  { %688 = vmatpush3.msra.mxu1 %v405_v63 }
 0x13c   :  { %689 = vmatprep.subr.mxu1 %v845_v0 }
 0x13d   :  { %690 = vmatpush3.msra.mxu1 %v404_v1 }
 0x13e   :  { %691 = vmatprep.subr.mxu1 %v845_v0 }
 0x13f   :  { %692 = vmatpush3.msra.mxu1 %v403_v2 }
 0x140   :  { %693 = vmatprep.subr.mxu1 %v845_v0 }
 0x141   :  { %694 = vmatpush3.msra.mxu1 %v402_v3 }
 0x142   :  { %695 = vmatprep.subr.mxu1 %v845_v0 }
 0x143   :  { %696 = vmatpush3.msra.mxu1 %v401_v4 }
 0x144   :  { %697 = vmatprep.subr.mxu1 %v845_v0 }
 0x145   :  { %698 = vmatpush3.msra.mxu1 %v400_v5 }
 0x146   :  { %699 = vmatprep.subr.mxu1 %v845_v0 }
 0x147   :  { %700 = vmatpush3.msra.mxu1 %v399_v6 }
 0x148   :  { %701 = vmatprep.subr.mxu1 %v845_v0 }
 0x149   :  { %702 = vmatpush3.msra.mxu1 %v398_v7 }
 0x14a   :  { %703 = vmatprep.subr.mxu1 %v845_v0 }
 0x14b   :  { %704 = vmatpush3.msra.mxu1 %v397_v8 }
 0x14c   :  { %705 = vmatprep.subr.mxu1 %v845_v0 }
 0x14d   :  { %706 = vmatpush3.msra.mxu1 %v396_v9 }
 0x14e   :  { %707 = vmatprep.subr.mxu1 %v845_v0 }
 0x14f   :  { %708 = vmatpush3.msra.mxu1 %v395_v10 }
 0x150   :  { %709 = vmatprep.subr.mxu1 %v845_v0 }
 0x151   :  { %710 = vmatpush3.msra.mxu1 %v394_v11 }
 0x152   :  { %711 = vmatprep.subr.mxu1 %v845_v0  ;;  %v507_v0 = vld [vmem:[%s1003_s6] ss:$0 sm:$0xff] }
 0x153   :  { %712 = vmatpush3.msra.mxu1 %v393_v12 }
 0x1f4   :  { %v274_v48 = vpop.f32.mrf.mxu1 }
 0x1f5   :  { %v275_v49 = vadd.f32 %v972_v47, %v274_v48 }
 0x1f6   :  { %v645_v50 = vpop.f32.mrf.mxu1 }
 0x1f7   :  { %v279_v51 = vmul.f32 0.044715, %v275_v49  ;;  %v278_v57 = vmul.f32 0.5, %v275_v49 }
 0x1f9   :  { %v280_v52 = vmul.f32 %v279_v51, %v275_v49 }
 0x1fb   :  { %v281_v53 = vmul.f32 %v280_v52, %v275_v49 }
 0x1fd   :  { %v282_v54 = vadd.f32 %v281_v53, %v275_v49 }
 0x1ff   :  { %v283_v55 = vmul.f32 0.7978846, %v282_v54 }
 0x201   :  { %727 = vtanh.f32 %v283_v55 }
 0x20e   :  { %v728_v56 = vpop.eup %727 }
 0x20f   :  { %v285_v58 = vadd.f32 1.0, %v728_v56 }
 0x211   :  { %v286_v59 = vmul.f32 %v285_v58, %v278_v57 }
 0x213   :  { %679 = vmatmul.mubr.f32.vlgmr.msra.gmra.mxu0 %v286_v59 }
 0x2d3   :  { %v378_v13 = vpop.f32.mrf.mxu0 }
 0x2d4   :  { %v379_v14 = vadd.f32 %v972_v47, %v378_v13 }
 0x2d5   :  { %v680_v15 = vpop.f32.mrf.mxu0 }
 0x2d6   :  { %v383_v16 = vmul.f32 0.044715, %v379_v14  ;;  %v382_v22 = vmul.f32 0.5, %v379_v14 }
 0x2d8   :  { %v384_v17 = vmul.f32 %v383_v16, %v379_v14 }
 0x2da   :  { %v385_v18 = vmul.f32 %v384_v17, %v379_v14 }
 0x2dc   :  { %v386_v19 = vadd.f32 %v385_v18, %v379_v14 }
 0x2de   :  { %v387_v20 = vmul.f32 0.7978846, %v386_v19 }
 0x2e0   :  { %729 = vtanh.f32 %v387_v20 }
 0x2ed   :  { %v730_v21 = vpop.eup %729 }
 0x2ee   :  { %v389_v23 = vadd.f32 1.0, %v730_v21 }
 0x2f0   :  { %v390_v24 = vmul.f32 %v389_v23, %v382_v22 }
 0x2f2   :  { %714 = vmatmul.mubr.f32.vlgmr.msra.gmra.mxu1 %v390_v24 }
 0x3b2   :  { %v482_v25 = vpop.f32.mrf.mxu1 }
 0x3b3   :  { %v483_v26 = vadd.f32 %v507_v0, %v482_v25 }
 0x3b4   :  { %v715_v27 = vpop.f32.mrf.mxu1 }
 0x3b5   :  { %486 = vst [vmem:[#allocation11] sm:$0xff] %v483_v26 }
 0x3b6   :  { %822 = shalt.err (!%p819_p10)
}
 0x3b7   :  { %496 = dma.vmem_to_hbm [thread:$0]  %s494_s24, 128, %s1004_s7, [#allocation5]  }
 0x3b8   :  { %837 = dma.done.wait [#allocation5], 128  }
 0x3b9   :  { %838 = vsyncadd [#allocation5], 4294967168 }
 0x3ba   :  { %500 = vsyncpa [#allocation4], 1 }
 0x3bb   :  { %501 = vsyncpa [#allocation7], 1 }
 0x3bc   :  { %502 = vsyncpa [#allocation10], 1 }
 0x3bd   :  { %503 = vsyncpa [#allocation5], 1 }

</bundles_post_ra>
